<compile_context>
chip_gen: v5e
topology: v5e:2x2
jax: 0.10.0
libtpu: 0.0.40
codegen_flags: <defaults>
</compile_context>

<pallas_src>
import functools

import jax
import jax.numpy as jnp
from jax import lax
from jax.experimental import pallas as pl
from jax.experimental.pallas import tpu as pltpu

BN_EPS = 1e-5
LANE = 128
SUBLANE = 8


def _round_up(x, m):
    return (x + m - 1) // m * m


def _pad2(a, rows, cols):
    r, c = a.shape
    return jnp.pad(a, ((0, rows - r), (0, cols - c)))


def _vmem_budget_bytes():
    """~75% of physical VMEM: <=48 MiB on v7x (64 MiB), ~96 MiB on v5e/v6e
    (128 MiB).  Leaves headroom for double-buffering + compiler scratch."""
    cap = 64 * 1024 * 1024
    try:
        cap = int(pltpu.get_tpu_info().vmem_capacity_bytes)
    except Exception:
        pass
    return min(cap * 3 // 4, 100 * 1024 * 1024)


# ----------------------------------------------------------------------------
# Encoder: fold eval-BN into the Linears, collapse the affine chain (f32).
# ----------------------------------------------------------------------------
def _collapse_encoder_params(p):
    s1 = p["g1"] * lax.rsqrt(p["v1"] + BN_EPS)
    w1 = p["w1"] * s1
    b1 = (p["b1"] - p["m1"]) * s1 + p["be1"]
    s2 = p["g2"] * lax.rsqrt(p["v2"] + BN_EPS)
    w2 = p["w2"] * s2
    b2 = (p["b2"] - p["m2"]) * s2 + p["be2"]
    w_eff = w1 @ (w2 @ p["w3"])                      # (Din, Dout)
    b_eff = (b1 @ w2 + b2) @ p["w3"] + p["b3"]       # (1, Dout)
    return w_eff, b_eff


# Kernel 1: all modality encoders in one call.
#   grid = (modality, row_tile, din_tile); the K (din) axis accumulates into
#   an f32 scratch, the bias is added on the last K step.  Output is a
#   lane-dense (N_pad, n_mod*128) slab.
def _mm_encoder_kernel(x_ref, w_ref, b_ref, out_ref, acc_ref):
    k = pl.program_id(2)

    @pl.when(k == 0)
    def _():
        acc_ref[...] = jnp.zeros_like(acc_ref)

    acc_ref[...] += jnp.dot(x_ref[...], w_ref[...],
                            preferred_element_type=jnp.float32)

    @pl.when(k == pl.num_programs(2) - 1)
    def _():
        out_ref[...] = acc_ref[...] + b_ref[...]


def multimodal_encoder_forward(h, params, *, vmem_budget):
    n = h.shape[0]
    input_dims = params["input_dims"]
    n_mod = len(params["encoders"])
    dout = params["encoders"][0]["w3"].shape[1]
    dp = _round_up(dout, LANE)

    din_max = max(input_dims)
    tk_din = min(512, _round_up(din_max, LANE))     # K tile over input features
    din_pad = _round_up(din_max, tk_din)

    n8 = _round_up(max(n, 1), SUBLANE)
    tm = min(512, n8)
    n_pad = _round_up(n8, tm)

    xs, ws, bs, nan_rows = [], [], [], []
    prev = 0
    for m, p in enumerate(params["encoders"]):
        din = input_dims[m]
        x = h[:, prev:prev + din]
        prev += din
        nan_rows.append(jnp.any(jnp.isnan(x), axis=1))
        x_clean = jnp.where(jnp.isnan(x), 0.0, x)
        xs.append(_pad2(x_clean, n_pad, din_pad))
        w_eff, b_eff = _collapse_encoder_params(p)
        ws.append(_pad2(w_eff, din_pad, dp))
        bs.append(_pad2(b_eff, 1, dp))
    # Encoder kept fully in f32: it is memory-bound, small next to the SAGE
    # layers, and f32 keeps the collapsed affine map accurate.
    x_stk = jnp.stack(xs)            # (n_mod, n_pad, din_pad) f32
    w_stk = jnp.stack(ws)            # (n_mod, din_pad, dp)    f32
    b_stk = jnp.stack(bs)            # (n_mod, 1, dp)          f32

    decoded = pl.pallas_call(
        _mm_encoder_kernel,
        out_shape=jax.ShapeDtypeStruct((n_pad, n_mod * dp), jnp.float32),
        grid_spec=pltpu.PrefetchScalarGridSpec(
            num_scalar_prefetch=0,
            grid=(n_mod, n_pad // tm, din_pad // tk_din),
            in_specs=[
                pl.BlockSpec((None, tm, tk_din), lambda m, i, k: (m, i, k)),
                pl.BlockSpec((None, tk_din, dp), lambda m, i, k: (m, k, 0)),
                pl.BlockSpec((None, 1, dp), lambda m, i, k: (m, 0, 0)),
            ],
            out_specs=pl.BlockSpec((tm, dp), lambda m, i, k: (i, m)),
            scratch_shapes=[pltpu.VMEM((tm, dp), jnp.float32)],
        ),
        compiler_params=pltpu.CompilerParams(
            dimension_semantics=("parallel", "parallel", "arbitrary"),
            vmem_limit_bytes=vmem_budget),
    )(x_stk, w_stk, b_stk)
    return decoded[:n], jnp.stack(nan_rows), dp, dout


# ----------------------------------------------------------------------------
# NaN-row masking + torch.median (lower median) imputation + modality average.
# TODO(synk): column-wise median needs a global sort over nodes; left as XLA
#             glue (a Pallas selection kernel is not worth it at these shapes).
# ----------------------------------------------------------------------------
def _impute_and_average(decoded_all, nan_rows, dp, dout, n_mod):
    n = decoded_all.shape[0]
    feat = jnp.zeros((n, dout), jnp.float32)
    for m in range(n_mod):
        dec = decoded_all[:, m * dp:m * dp + dout]          # true columns only
        nanr = nan_rows[m]
        n_valid = jnp.sum(jnp.logical_not(nanr)).astype(jnp.int32)
        masked = jnp.where(nanr[:, None], jnp.inf, dec)
        srt = jnp.sort(masked, axis=0)
        med_idx = jnp.maximum((n_valid - 1) // 2, 0)        # guard n_valid == 0
        median = jnp.where(n_valid > 0, jnp.take(srt, med_idx, axis=0), 0.0)
        feat = feat + jnp.where(nanr[:, None], median[None, :], dec)
    return feat / float(n_mod)


# ----------------------------------------------------------------------------
# Kernel 2: SAGEConv('mean') layer, row- and K(column)-tiled.
#   acc    += adj[i, k-slab] @ h[k-slab]                 (f32 accumulator)
#   last k:  z = h_self @ W_self + acc @ W_neigh + b; relu; eval-BN scale/shift
# ----------------------------------------------------------------------------
def _sage_kernel(adj_ref, hk_ref, hself_ref, ws_ref, wn_ref, b_ref, s_ref,
                 t_ref, out_ref, acc_ref, *, relu_bn):
    k = pl.program_id(1)

    @pl.when(k == 0)
    def _():
        acc_ref[...] = jnp.zeros_like(acc_ref)

    acc_ref[...] += jnp.dot(adj_ref[...], hk_ref[...],
                            preferred_element_type=jnp.float32)

    @pl.when(k == pl.num_programs(1) - 1)
    def _():
        z = jnp.dot(hself_ref[...], ws_ref[...],
                    preferred_element_type=jnp.float32)
        z += jnp.dot(acc_ref[...].astype(jnp.bfloat16), wn_ref[...],
                     preferred_element_type=jnp.float32)
        z += b_ref[...]
        if relu_bn:
            z = jnp.maximum(z, 0.0)
            z = z * s_ref[...] + t_ref[...]
        out_ref[...] = z.astype(out_ref.dtype)


def _sage_vmem_fits(tm, tk, fpad, budget):
    adj = 2 * tm * tk * 2                 # double-buffered bf16 adjacency slab
    hk = 2 * tk * fpad * 2
    hs = 2 * tm * fpad * 2
    acc = tm * fpad * 4
    out = 2 * tm * fpad * 4
    w = 2 * (2 * fpad * fpad * 2) + 3 * 2 * fpad * 4
    return adj + hk + hs + acc + out + w <= budget


def _largest_row_divisor(n_pad):
    """Largest multiple of 8 that divides n_pad and is <= n_pad // 2."""
    for t in range(n_pad // 2 // SUBLANE * SUBLANE, SUBLANE - 1, -SUBLANE):
        if n_pad % t == 0:
            return t
    return n_pad


def _choose_sage_tiles(n, fpad_max, vmem_budget):
    """(tm, tk, n_pad).  Large graphs: 128-aligned square tiles sized by the
    VMEM budget (K-tiling decouples VMEM from N).  Small graphs: single K step
    and >=2 row tiles when possible so the 'parallel' axis can use both v7x
    TensorCores."""
    n8 = _round_up(max(n, 1), SUBLANE)
    waste_cap = max(_round_up(n8, LANE), int(n8 * 1.25))
    tile = 128
    for cand in (2048, 1024, 512, 256, 128):
        if (_round_up(n8, cand) <= waste_cap
                and _sage_vmem_fits(cand, cand, fpad_max, vmem_budget)):
            tile = cand
            break
    if n8 > tile:
        return tile, tile, _round_up(n8, tile)
    n_pad = n8
    tk = n_pad                       # full column range, one K step
    tm = _largest_row_divisor(n_pad)
    return tm, tk, n_pad


def sage_layer(adj_p, h_p, p, bn, *, out_dtype, tm, tk, vmem_budget):
    n_pad = adj_p.shape[0]
    fin_pad = h_p.shape[1]
    fout_pad = p["w_self_p"].shape[1]
    if bn is None:
        s = jnp.ones((1, fout_pad), jnp.float32)
        t = jnp.zeros((1, fout_pad), jnp.float32)
    else:
        s, t = bn["scale"], bn["shift"]
    # TODO(synk): on v5e/v6e `pipeline_mode=pl.Buffered(3)` on the adj spec can
    # hide DMA bubbles between slabs; left at the default depth for safety.
    return pl.pallas_call(
        functools.partial(_sage_kernel, relu_bn=bn is not None),
        out_shape=jax.ShapeDtypeStruct((n_pad, fout_pad), out_dtype),
        grid_spec=pltpu.PrefetchScalarGridSpec(
            num_scalar_prefetch=0,
            grid=(n_pad // tm, n_pad // tk),
            in_specs=[
                pl.BlockSpec((tm, tk), lambda i, k: (i, k)),         # adj slab
                pl.BlockSpec((tk, fin_pad), lambda i, k: (k, 0)),    # h (neigh)
                pl.BlockSpec((tm, fin_pad), lambda i, k: (i, 0)),    # h (self)
                pl.BlockSpec((fin_pad, fout_pad), lambda i, k: (0, 0)),
                pl.BlockSpec((fin_pad, fout_pad), lambda i, k: (0, 0)),
                pl.BlockSpec((1, fout_pad), lambda i, k: (0, 0)),
                pl.BlockSpec((1, fout_pad), lambda i, k: (0, 0)),
                pl.BlockSpec((1, fout_pad), lambda i, k: (0, 0)),
            ],
            out_specs=pl.BlockSpec((tm, fout_pad), lambda i, k: (i, 0)),
            scratch_shapes=[pltpu.VMEM((tm, fin_pad), jnp.float32)],
        ),
        compiler_params=pltpu.CompilerParams(
            dimension_semantics=("parallel", "arbitrary"),
            vmem_limit_bytes=vmem_budget),
    )(adj_p, h_p, h_p, p["w_self_p"], p["w_neigh_p"], p["bias_p"], s, t)


def _preprocess_gnn_params(params, in_pad):
    """Pad to lane-dense shapes, bf16 weights, fold eval-BN to (scale, shift)."""
    gnn_pp, bn_pp = [], []
    n_layers = len(params["gnn"])
    fin_pad = in_pad
    for l, p in enumerate(params["gnn"]):
        fout = p["w_self"].shape[1]
        fout_pad = _round_up(fout, LANE)
        gnn_pp.append({
            "w_self_p": _pad2(p["w_self"], fin_pad, fout_pad).astype(jnp.bfloat16),
            "w_neigh_p": _pad2(p["w_neigh"], fin_pad, fout_pad).astype(jnp.bfloat16),
            "bias_p": _pad2(p["bias"], 1, fout_pad),
            "fout": fout,
        })
        if l < n_layers - 1:
            bn = params["bn"][l]
            s = bn["gamma"] * lax.rsqrt(bn["var"] + BN_EPS)
            t = bn["beta"] - bn["mean"] * s
            bn_pp.append({"scale": _pad2(s, 1, fout_pad),
                          "shift": _pad2(t, 1, fout_pad)})
        fin_pad = fout_pad
    return gnn_pp, bn_pp


def gsage_mme_forward(adjs_mean, h, params):
    """Full GSage_MME.forward (eval mode)."""
    n = h.shape[0]
    vmem_budget = _vmem_budget_bytes()
    n_mod = len(params["encoders"])

    decoded_all, nan_rows, dp, dout = multimodal_encoder_forward(
        h, params, vmem_budget=vmem_budget)
    feat = _impute_and_average(decoded_all, nan_rows, dp, dout, n_mod)  # (n, dout)

    gnn_pp, bn_pp = _preprocess_gnn_params(params, dp)
    fpad_max = max([dp] + [p["w_self_p"].shape[1] for p in gnn_pp])
    tm, tk, n_pad = _choose_sage_tiles(n, fpad_max, vmem_budget)

    # TODO(synk): if the graph is reused across calls, hoist this padded bf16
    # adjacency preparation out of the (jit'd) forward and cache it.
    adjs_p = [_pad2(a, n_pad, n_pad).astype(jnp.bfloat16) for a in adjs_mean]

    n_layers = len(gnn_pp)
    feat_p = _pad2(feat, n_pad, dp).astype(jnp.bfloat16)
    for l in range(n_layers):
        last = (l == n_layers - 1)
        feat_p = sage_layer(adjs_p[l], feat_p, gnn_pp[l],
                            None if last else bn_pp[l],
                            out_dtype=jnp.float32 if last else jnp.bfloat16,
                            tm=tm, tk=tk, vmem_budget=vmem_budget)
    return feat_p[:n, :gnn_pp[-1]["fout"]]


# ----------------------------------------------------------------------------
# Pure-JAX f32 reference of the original (unfolded) module, for validation.
# ----------------------------------------------------------------------------
def _encoder_ref(x, p):
    h = x @ p["w1"] + p["b1"]
    h = (h - p["m1"]) * lax.rsqrt(p["v1"] + BN_EPS) * p["g1"] + p["be1"]
    h = h @ p["w2"] + p["b2"]
    h = (h - p["m2"]) * lax.rsqrt(p["v2"] + BN_EPS) * p["g2"] + p["be2"]
    return h @ p["w3"] + p["b3"]


def gsage_mme_reference(adjs_mean, h, params):
    feat = 0.0
    prev = 0
    for m, p in enumerate(params["encoders"]):
        din = params["input_dims"][m]
        x = h[:, prev:prev + din]
        prev += din
        nanr = jnp.any(jnp.isnan(x), axis=1)
        dec = _encoder_ref(jnp.where(jnp.isnan(x), 0.0, x), p)
        n_valid = jnp.sum(jnp.logical_not(nanr)).astype(jnp.int32)
        srt = jnp.sort(jnp.where(nanr[:, None], jnp.inf, dec), axis=0)
        med_idx = jnp.maximum((n_valid - 1) // 2, 0)
        median = jnp.where(n_valid > 0, jnp.take(srt, med_idx, axis=0), 0.0)
        feat = feat + jnp.where(nanr[:, None], median[None, :], dec)
    feat = feat / float(len(params["encoders"]))
    n_layers = len(params["gnn"])
    for l, p in enumerate(params["gnn"]):
        z = feat @ p["w_self"] + (adjs_mean[l] @ feat) @ p["w_neigh"] + p["bias"]
        if l < n_layers - 1:
            z = jnp.maximum(z, 0.0)
            bn = params["bn"][l]
            z = (z - bn["mean"]) * lax.rsqrt(bn["var"] + BN_EPS) * bn["gamma"] + bn["beta"]
        feat = z
    return feat


# ----------------------------------------------------------------------------
# Deterministic parameter / graph construction.
# ----------------------------------------------------------------------------
def _row(key, f, scale=0.1):
    return scale * jax.random.normal(key, (1, f), jnp.float32)


def make_params(key, input_dims, latent_dims, decoder_dim, hidden_feats, num_classes):
    params = {"input_dims": list(input_dims), "encoders": [], "gnn": [], "bn": []}
    for din, lat in zip(input_dims, latent_dims):
        key, *ks = jax.random.split(key, 12)
        p = {
            "w1": 0.05 * jax.random.normal(ks[0], (din, 500), jnp.float32),
            "b1": _row(ks[1], 500),
            "g1": 1.0 + _row(ks[2], 500),
            "be1": _row(ks[3], 500),
            "m1": _row(ks[4], 500),
            "v1": 1.0 + jnp.abs(_row(ks[5], 500)),
            "w2": 0.05 * jax.random.normal(ks[6], (500, lat), jnp.float32),
            "b2": _row(ks[7], lat),
            "g2": 1.0 + _row(ks[8], lat),
            "be2": _row(ks[9], lat),
            "m2": _row(ks[10], lat),
            "v2": 1.0 + jnp.abs(_row(key, lat)),
        }
        key, k1, k2 = jax.random.split(key, 3)
        p["w3"] = 0.05 * jax.random.normal(k1, (lat, decoder_dim), jnp.float32)
        p["b3"] = _row(k2, decoder_dim)
        params["encoders"].append(p)

    dims = [decoder_dim] + list(hidden_feats) + [num_classes]
    for l in range(len(dims) - 1):
        fin, fout = dims[l], dims[l + 1]
        key, k1, k2, k3 = jax.random.split(key, 4)
        params["gnn"].append({
            "w_self": 0.1 * jax.random.normal(k1, (fin, fout), jnp.float32),
            "w_neigh": 0.1 * jax.random.normal(k2, (fin, fout), jnp.float32),
            "bias": _row(k3, fout),
        })
        if l < len(dims) - 2:
            key, k1, k2, k3, k4 = jax.random.split(key, 5)
            params["bn"].append({
                "gamma": 1.0 + _row(k1, fout),
                "beta": _row(k2, fout),
                "mean": _row(k3, fout),
                "var": 1.0 + jnp.abs(_row(k4, fout)),
            })
    return params


def make_adj_mean(key, n):
    a = (jax.random.uniform(key, (n, n)) > 0.6).astype(jnp.float32)
    a = a * (1.0 - jnp.eye(n, dtype=jnp.float32))           # no self-loops
    deg = jnp.sum(a, axis=1, keepdims=True)
    return a / jnp.maximum(deg, 1.0)                        # mean aggregation


if __name__ == "__main__":
    key = jax.random.PRNGKey(0)

    N = 8                       # nodes
    input_dims = [16, 12]       # two omic modalities
    latent_dims = [8, 8]
    decoder_dim = 32
    hidden_feats = [32]
    num_classes = 4

    key, kp, kh, kg0, kg1 = jax.random.split(key, 5)
    params = make_params(kp, input_dims, latent_dims, decoder_dim,
                         hidden_feats, num_classes)

    h = jax.random.normal(kh, (N, sum(input_dims)), jnp.float32)
    h = h.at[1, :input_dims[0]].set(jnp.nan)                 # NaN row, modality 0
    h = h.at[3, input_dims[0]:].set(jnp.nan)                 # NaN row, modality 1

    adjs = [make_adj_mean(kg0, N), make_adj_mean(kg1, N)]

    out = jax.block_until_ready(gsage_mme_forward(adjs, h, params))
    ref = jax.block_until_ready(gsage_mme_reference(adjs, h, params))

    assert out.shape == (N, num_classes)
    assert bool(jnp.all(jnp.isfinite(out)))
    max_err = float(jnp.max(jnp.abs(out - ref)))
    assert max_err < 5e-2, f"max abs err vs f32 reference: {max_err}"
    print("KERNEL_OK")
</pallas_src>

<mosaic_0001>
module attributes {stable_mosaic.version = 11 : i64} {
  func.func @_mm_encoder_kernel(%arg0: i32, %arg1: i32, %arg2: i32, %arg3: memref<1x8x128xf32, #tpu.memory_space<vmem>>, %arg4: memref<1x128x128xf32, #tpu.memory_space<vmem>>, %arg5: memref<1x1x128xf32, #tpu.memory_space<vmem>>, %arg6: memref<8x128xf32, #tpu.memory_space<vmem>>, %arg7: memref<8x128xf32, #tpu.memory_space<vmem>>) attributes {dimension_semantics = [#tpu.dimension_semantics<parallel>, #tpu.dimension_semantics<parallel>, #tpu.dimension_semantics<arbitrary>], iteration_bounds = array<i64: 2, 1, 1>, scalar_prefetch = 0 : i64, scratch_operands = 1 : i64, tpu.core_type = #tpu.core_type<tc>, window_params = [{transform_indices = @transform_0, window_bounds = array<i64: 1, 8, 128>}, {transform_indices = @transform_1, window_bounds = array<i64: 1, 128, 128>}, {transform_indices = @transform_2, window_bounds = array<i64: 1, 1, 128>}, {transform_indices = @transform_3, window_bounds = array<i64: 8, 128>}]} {
    %c0_i32 = arith.constant 0 : i32
    %0 = arith.cmpi eq, %arg2, %c0_i32 : i32
    %1 = arith.extui %0 : i1 to i32
    %c0_i32_0 = arith.constant 0 : i32
    %2 = arith.cmpi ne, %1, %c0_i32_0 : i32
    scf.if %2 {
      %cst_12 = arith.constant 0.000000e+00 : f32
      %14 = vector.broadcast %cst_12 : f32 to vector<8x128xf32>
      %c0_13 = arith.constant 0 : index
      %c0_14 = arith.constant 0 : index
      %15 = vector.load %arg7[%c0_13, %c0_14] : memref<8x128xf32, #tpu.memory_space<vmem>>, vector<8x128xf32>
      tpu.vector_store %arg7[%c0_13, %c0_14], %14 {strides = array<i32>} : memref<8x128xf32, #tpu.memory_space<vmem>>, vector<8x128xf32>,
    } else {
    }
    %c0 = arith.constant 0 : index
    %c0_1 = arith.constant 0 : index
    %3 = vector.load %arg7[%c0, %c0_1] : memref<8x128xf32, #tpu.memory_space<vmem>>, vector<8x128xf32>
    %c0_2 = arith.constant 0 : index
    %c0_3 = arith.constant 0 : index
    %c0_4 = arith.constant 0 : index
    %4 = vector.load %arg3[%c0_2, %c0_3, %c0_4] : memref<1x8x128xf32, #tpu.memory_space<vmem>>, vector<1x8x128xf32>
    %5 = vector.shape_cast %4 : vector<1x8x128xf32> to vector<8x128xf32>
    %c0_5 = arith.constant 0 : index
    %c0_6 = arith.constant 0 : index
    %c0_7 = arith.constant 0 : index
    %6 = vector.load %arg4[%c0_5, %c0_6, %c0_7] : memref<1x128x128xf32, #tpu.memory_space<vmem>>, vector<1x128x128xf32>
    %7 = vector.shape_cast %6 : vector<1x128x128xf32> to vector<128x128xf32>
    %cst = arith.constant dense<0.000000e+00> : vector<8x128xf32>
    %8 = tpu.matmul %5, %7, %cst {dimension_numbers = #tpu.dot_dimension_numbers<[1], [0], [0], [1], [0, 0, 1, 1], [], []>} : vector<8x128xf32>, vector<128x128xf32>, vector<8x128xf32> -> vector<8x128xf32>
    %9 = arith.addf %3, %8 : vector<8x128xf32>
    %c0_8 = arith.constant 0 : index
    %c0_9 = arith.constant 0 : index
    %10 = vector.load %arg7[%c0_8, %c0_9] : memref<8x128xf32, #tpu.memory_space<vmem>>, vector<8x128xf32>
    tpu.vector_store %arg7[%c0_8, %c0_9], %9 {strides = array<i32>} : memref<8x128xf32, #tpu.memory_space<vmem>>, vector<8x128xf32>,
    %c0_i32_10 = arith.constant 0 : i32
    %11 = arith.cmpi eq, %arg2, %c0_i32_10 : i32
    %12 = arith.extui %11 : i1 to i32
    %c0_i32_11 = arith.constant 0 : i32
    %13 = arith.cmpi ne, %12, %c0_i32_11 : i32
    scf.if %13 {
      %c0_12 = arith.constant 0 : index
      %c0_13 = arith.constant 0 : index
      %14 = vector.load %arg7[%c0_12, %c0_13] : memref<8x128xf32, #tpu.memory_space<vmem>>, vector<8x128xf32>
      %c0_14 = arith.constant 0 : index
      %c0_15 = arith.constant 0 : index
      %c0_16 = arith.constant 0 : index
      %15 = vector.load %arg5[%c0_14, %c0_15, %c0_16] : memref<1x1x128xf32, #tpu.memory_space<vmem>>, vector<1x1x128xf32>
      %16 = vector.shape_cast %15 : vector<1x1x128xf32> to vector<1x128xf32>
      %17 = vector.broadcast %16 : vector<1x128xf32> to vector<8x128xf32>
      %18 = arith.addf %14, %17 : vector<8x128xf32>
      %c0_17 = arith.constant 0 : index
      %c0_18 = arith.constant 0 : index
      %19 = vector.load %arg6[%c0_17, %c0_18] : memref<8x128xf32, #tpu.memory_space<vmem>>, vector<8x128xf32>
      tpu.vector_store %arg6[%c0_17, %c0_18], %18 {strides = array<i32>} : memref<8x128xf32, #tpu.memory_space<vmem>>, vector<8x128xf32>,
    } else {
    }
    return
  }
  func.func @transform_0(%arg0: i32, %arg1: i32, %arg2: i32) -> (i32, i32, i32) {
    %c0_i32 = arith.constant 0 : i32
    return %arg0, %arg1, %arg2 : i32, i32, i32
  }
  func.func @transform_1(%arg0: i32, %arg1: i32, %arg2: i32) -> (i32, i32, i32) {
    %c0_i32 = arith.constant 0 : i32
    %c0_i32_0 = arith.constant 0 : i32
    return %arg0, %arg2, %c0_i32 : i32, i32, i32
  }
  func.func @transform_2(%arg0: i32, %arg1: i32, %arg2: i32) -> (i32, i32, i32) {
    %c0_i32 = arith.constant 0 : i32
    %c0_i32_0 = arith.constant 0 : i32
    %c0_i32_1 = arith.constant 0 : i32
    return %arg0, %c0_i32, %c0_i32_0 : i32, i32, i32
  }
  func.func @transform_3(%arg0: i32, %arg1: i32, %arg2: i32) -> (i32, i32) {
    %c0_i32 = arith.constant 0 : i32
    return %arg1, %arg0 : i32, i32
  }
}

</mosaic_0001>

<bundles_post_ra>
// kernel: tpu_custom_call.1
= control target key start
LH: loop header
LB: loop body
LE: loop exit
PB: predicated region body
PF: predicated region fallthrough
CT: control target
= control target key end

     0   :  { %s976_s0 = inlined_call_operand.hbm [shape: f32[2,8,128], index: 0, kind: input, shape index: {}]   ;;  %s977_s1 = inlined_call_operand.hbm [shape: f32[2,128,128], index: 1, kind: input, shape index: {}]   ;;  %s978_s2 = inlined_call_operand.hbm [shape: f32[2,1,128], index: 2, kind: input, shape index: {}]   ;;  %s979_s3 = inlined_call_operand.hbm [shape: f32[8,256], index: 3, kind: output, shape index: {}]  }
   0x1   :  { %982 = sst [smem:[#allocation16_spill]] %s977_s1 }
   0x2   :  { %8 = vsyncpa [#allocation4], 0 }
   0x3   :  { %10 = vsyncpa [#allocation4 + $0x1], 0 }
   0x4   :  { %11 = vsyncpa [#allocation7], 0 }
   0x5   :  { %13 = vsyncpa [#allocation7 + $0x1], 0 }
   0x6   :  { %14 = vsyncpa [#allocation5], 0 }
   0x7   :  { %16 = vsyncpa [#allocation5 + $0x1], 0  ;;  %s787_s12 = smov 0   ;;  %s789_s13 = smov 0  }
   0x8   :  { %s791_s14 = smov 0   ;;  %s793_s15 = smov 0  }
   0x9   :  { %s795_s16 = smov 0   ;;  %s797_s17 = smov 0  }
   0xa LB: > { %983 = sst [smem:[#allocation13_spill]] %s751_s14  ;;  %s818_s18 = sadd.s32 4294967295, %s763_s17   ;;  %s763_s17 = sphi %s797_s17, %s22_s17   ;;  %s759_s16 = sphi %s795_s16, %s1000_s16   ;;  %s755_s15 = sphi %s793_s15, %s999_s15   ;;  %s751_s14 = sphi %s791_s14, %s998_s14   ;;  %s747_s13 = sphi %s789_s13, %s997_s13   ;;  %s743_s12 = sphi %s787_s12, %s996_s12  }
   0xb   : > { %s495_s19 = sadd.s32 4294967294, %s763_s17   ;;  %s41_s20 = sadd.s32 1, %s759_s16 }
   0xc   : > { %s52_s21 = sadd.s32 1, %s751_s14  ;;  %p43_p0 = scmp.ge.s32.totalorder %s41_s20, 2 }
   0xd   : > { %p59_p1 = scmp.ne.s32.totalorder %s751_s14, %s747_s13  ;;  %p60_p2 = scmp.eq.s32.totalorder %s763_s17, 0 }
   0xe   : > { %p65_p3 = scmp.ne.s32.totalorder %s747_s13, %s743_s12  ;;  %s1002_s20 = smov (%p43_p0, %s41_s20), 0 }
   0xf   : > { %984 = sst [smem:[#allocation14_spill]] %s1002_s20  ;;  %p830_p4 = por %p60_p2, %p59_p1 }
  0x10   : > { %p66_p5 = scmp.eq.s32.totalorder %s818_s18, 0  ;;  %s45_s23 = ssub.s32 %s759_s16, %s1002_s20 }
  0x11   : > { %p145_p6 = scmp.eq.s32.totalorder %s818_s18, 1  ;;  %p50_p7 = scmp.eq.s32.totalorder %s45_s23, 0 }
  0x12   : > { %p838_p8 = por %p66_p5, %p65_p3  ;;  %p151_p10 = scmp.eq.s32.totalorder %s495_s19, 1 }
  0x13   : > { %p842_p9 = por %p145_p6, %p59_p1  ;;  %p497_p12 = scmp.ge.s32.totalorder %s763_s17, 2 }
  0x14   : > { %s847_s26 = scalar_select %p50_p7, %s751_s14, %s52_s21  }
  0x15   : > { %p849_p11 = por %p151_p10, %p65_p3  ;;  %p534_p13 = scmp.lt.s32.totalorder %s763_s17, 2 }
  0x16   : > { %988 = sst [smem:[#allocation15_spill]] %s847_s26  ;;  %s856_s28 = sand.u32 1, %s751_s14  }
  0x17   : > { %s192_s29 = sand.u32 1, %s763_s17   ;;  %s500_s30 = sshll.u32 %s856_s28, 7 }
  0x18   : > { %p862_p0 = pnand %p534_p13, %p830_p4  ;;  %s511_s5 = sshll.u32 %s759_s16, 7 }
  0x19   : > { %s991_s1 = sld [smem:[#allocation16_spill]]  ;;  %s196_s10 = scalar_lea.vmem [#allocation6], %s500_s30 }
  0x1a   : > { %s206_s11 = sshll.u32 %s196_s10, 4  ;;  %s193_s19 = scalar_lea.sflag [#allocation7], %s192_s29  ;;  %s207_s11 = int_to_ptr.vmem [resolvable:$true] %s206_s11 }
  0x1b   : > { %s765_s21 = smov 128   ;;  %s766_s22 = smov 8  }
  0x1c   : > { %p503_p1 = scmp.ge.s32.totalorder %s763_s17, 1  ;;  %p231_p2 = scmp.lt.s32.totalorder %s763_s17, 3 }
  0x1d   : > { %s499_s30 = sshll.u32 %s759_s16, 3  ;;  %s219_s26 = scalar_lea.vmem [#allocation8], %s856_s28 }
  0x1e   : > { %p874_p3 = pnand %p503_p1, %p231_p2  ;;  %s181_s29 = scalar_lea.hbm %s976_s0, %s499_s30 }
  0x1f   : > { %s203_s8 = scalar_lea.hbm %s991_s1, %s511_s5  ;;  %s498_s5 = sshll.u32 %s856_s28, 3 }
  0x20   : > { %s204_s9 = sshll.u32 %s203_s8, 4  ;;  %s183_s8 = sshll.u32 %s181_s29, 4  ;;  %s205_s9 = int_to_ptr.hbm [resolvable:$true] %s204_s9  ;;  %s184_s8 = int_to_ptr.hbm [resolvable:$true] %s183_s8 }
  0x21   : > { %526 = dma.hbm_to_vmem [thread:$0]  (!%p862_p0), %s205_s9, 2048, %s207_s11, %s193_s19, %s765_s21, %s765_s21, %s766_s22  }
  0x22   : > { %s175_s10 = scalar_lea.vmem [#allocation3], %s498_s5  ;;  %s172_s9 = scalar_lea.sflag [#allocation4], %s856_s28 }
  0x23   : > { %s185_s1 = sshll.u32 %s175_s10, 4  ;;  %s222_s22 = scalar_lea.hbm %s978_s2, %s759_s16  ;;  %s186_s1 = int_to_ptr.vmem [resolvable:$true] %s185_s1 }
  0x24   : > { %523 = dma.hbm_to_vmem [thread:$0]  (!%p862_p0), %s184_s8, 128, %s186_s1, %s172_s9  }
  0x25   : > { %s224_s20 = sshll.u32 %s222_s22, 4  ;;  %s226_s14 = sshll.u32 %s219_s26, 4  ;;  %s225_s20 = int_to_ptr.hbm [resolvable:$true] %s224_s20  ;;  %s227_s14 = int_to_ptr.vmem [resolvable:$true] %s226_s14 }
  0x26   : > { %529 = dma.hbm_to_vmem [thread:$0]  (!%p862_p0), %s225_s20, 16, %s227_s14, %s193_s19  }
  0x27   : > { %235 = sbr.rel (%p874_p3) target bundleno = 211 (0xd3), region = 32  ;;  %s896_s5 = sand.u32 (!%p874_p3), 1, %s747_s13  }
  0x28   : > { %s504_s1 = sshll.u32 (!%p874_p3), %s896_s5, 3  ;;  %s238_s30 = scalar_lea.sflag (!%p874_p3), [#allocation4], %s896_s5 }
  0x29   : > { %s902_s6 = scalar_lea.vmem (!%p874_p3), [#allocation3], %s504_s1 }
  0x2c   : > { %730 = dma.done.wait (%p838_p8), %s238_s30, 128  }
  0x2d   : > { %732 = vsyncadd (%p838_p8), %s238_s30, 4294967168  ;;  %s247_s14 = sand.u32 1, %s818_s18   ;;  %s505_s20 = sshll.u32 %s896_s5, 7 }
  0x2e   : > { %s248_s26 = scalar_lea.sflag [#allocation7], %s247_s14  ;;  %s910_s28 = scalar_lea.vmem [#allocation6], %s505_s20 }
  0x2f   : > { %734 = dma.done.wait (%p838_p8), %s248_s26, 2064  }
  0x30   : > { %736 = vsyncadd (%p838_p8), %s248_s26, 4294965232  ;;  %v316_v0 = vld [vmem:[%s910_s28 + $0x78] sm:$0xff]  ;;  %v315_v1 = vld [vmem:[%s910_s28 + $0x70] sm:$0xff]  ;;  %s260_s18 = scalar_lea.vmem [#allocation8], %s896_s5  ;;  %s508_s24 = sshll.u32 %s755_s15, 3 }
  0x31   : > { %317 = vmatpush.msra.mxu0 %v316_v0  ;;  %v314_v2 = vld [vmem:[%s910_s28 + $0x68] sm:$0xff]  ;;  %v313_v3 = vld [vmem:[%s910_s28 + $0x60] sm:$0xff]  ;;  %v312_v4 = vld [vmem:[%s910_s28 + $0x58] sm:$0xff]  ;;  %s362_s23 = scalar_lea.hbm %s979_s3, %s508_s24  ;;  %s292_s7 = scalar_lea.vmem [#allocation9], %s504_s1 }
  0x32   : > { %v311_v5 = vld [vmem:[%s910_s28 + $0x50] sm:$0xff]  ;;  %v310_v6 = vld [vmem:[%s910_s28 + $0x48] sm:$0xff]  ;;  %v309_v7 = vld [vmem:[%s910_s28 + $0x40] sm:$0xff]  ;;  %s364_s29 = sshll.u32 %s292_s7, 4  ;;  %s366_s8 = sshll.u32 %s362_s23, 4  ;;  %s365_s29 = int_to_ptr.vmem [resolvable:$true] %s364_s29  ;;  %s367_s8 = int_to_ptr.hbm [resolvable:$true] %s366_s8 }
  0x33   : > { %318 = vmatpush.msra.mxu0 %v315_v1  ;;  %v308_v8 = vld [vmem:[%s910_s28 + $0x38] sm:$0xff]  ;;  %v307_v9 = vld [vmem:[%s910_s28 + $0x30] sm:$0xff]  ;;  %v306_v10 = vld [vmem:[%s910_s28 + $0x28] sm:$0xff]  ;;  %s350_s10 = scalar_lea.sflag [#allocation5], %s896_s5  ;;  %s691_s9 = sshra.s32 %s367_s8, 4  ;;  %s692_s9 = int_to_ptr.hbm [resolvable:$true] %s691_s9 }
  0x34   : > { %v305_v11 = vld [vmem:[%s910_s28 + $0x20] sm:$0xff]  ;;  %v304_v12 = vld [vmem:[%s910_s28 + $0x18] sm:$0xff]  ;;  %v303_v13 = vld [vmem:[%s910_s28 + $0x10] sm:$0xff]  ;;  %s693_s15 = scalar_lea.hbm %s692_s9, 8  ;;  %s697_s22 = scalar_lea.hbm %s979_s3, 16 }
  0x35   : > { %319 = vmatpush.msra.mxu0 %v314_v2  ;;  %v302_v14 = vld [vmem:[%s910_s28 + $0x8] sm:$0xff]  ;;  %v301_v15 = vld [vmem:[%s910_s28] sm:$0xff]  ;;  %v300_v16 = vld [vmem:[%s902_s6] sm:$0xff]  ;;  %p694_p4 = scmp.ne.s32.totalorder %s692_s9, %s693_s15  ;;  %p698_p7 = scmp.lt.s32.totalorder %s692_s9, %s979_s3 }
  0x36   : > { %v586_v17 = vld [vmem:[%s260_s18] ss:$0 sm:$0xff]  ;;  %p699_p8 = scmp.lt.s32.totalorder %s697_s22, %s693_s15 }
  0x37   : > { %320 = vmatpush.msra.mxu0 %v313_v3  ;;  %p695_p5 = pnand %p694_p4, %p842_p9 }
  0x38   : > { %p700_p10 = por %p699_p8, %p698_p7 }
  0x39   : > { %321 = vmatpush.msra.mxu0 %v312_v4  ;;  %p696_p6 = pneg %p695_p5 }
  0x3b   : > { %322 = vmatpush.msra.mxu0 %v311_v5  ;;  %p701_p13 = pnand %p700_p10, %p696_p6 }
  0x3d   : > { %323 = vmatpush.msra.mxu0 %v310_v6 }
  0x3f   : > { %324 = vmatpush.msra.mxu0 %v309_v7 }
  0x41   : > { %325 = vmatpush.msra.mxu0 %v308_v8 }
  0x43   : > { %326 = vmatpush.msra.mxu0 %v307_v9 }
  0x45   : > { %327 = vmatpush.msra.mxu0 %v306_v10 }
  0x47   : > { %328 = vmatpush.msra.mxu0 %v305_v11 }
  0x49   : > { %329 = vmatpush.msra.mxu0 %v304_v12 }
  0x4b   : > { %330 = vmatpush.msra.mxu0 %v303_v13 }
  0x4d   : > { %331 = vmatpush.msra.mxu0 %v302_v14 }
  0x4f   : > { %332 = vmatpush.msra.mxu0 %v301_v15 }
  0x50   : > { %333 = vmatmul.f32.vlgmr.msra.gmra.mxu0 %v300_v16 }
  0xcd   : > { %v334_v18 = vpop.f32.mrf.mxu0 }
  0xce   : > { %v347_v19 = vadd.f32 %v586_v17, %v334_v18 }
  0xd0   : > { %348 = vst [vmem:[%s292_s7] sm:$0xff] %v347_v19 }
  0xd1   : > { %704 = shalt.err (!%p701_p13)
}
  0xd2   : > { %518 = dma.vmem_to_hbm [thread:$0]  (%p842_p9), %s365_s29, 128, %s367_s8, %s350_s10  }
  0xd3 PF: > { %s378_s5 = sand.u32 1, %s743_s12   ;;  %p531_p0 = pnand %p497_p12, %p849_p11 }
  0xd4   : > { %s379_s6 = scalar_lea.sflag [#allocation5], %s378_s5 }
  0xd5   : > { %p532_p1 = pneg %p531_p0 }
  0xd7   : > { %738 = dma.done.wait (%p532_p1), %s379_s6, 128  }
  0xd8   : > { %740 = vsyncadd (%p532_p1), %s379_s6, 4294967168  ;;  %s22_s17 = sadd.s32 1, %s763_s17   ;;  %s993_s14 = sld [smem:[#allocation13_spill]] }
  0xd9   : > { %p19_p2 = scmp.ge.s32.totalorder %s22_s17, 4   ;;  %s994_s20 = sld [smem:[#allocation15_spill]] }
  0xda   : > { %s995_s25 = sld [smem:[#allocation14_spill]]  ;;  %s996_s12 = smov %s747_s13 }
  0xdb   : > { %s999_s15 = smov %s759_s16 }
  0xdc   :  { %21 = sbr.rel (!%p19_p2) target bundleno = 10 (0xa), region = 109 }
  0xde   : > { %s997_s13 = smov %s993_s14 }
  0xdf   : > { %s998_s14 = smov %s994_s20 }
  0xe0   : > { %s1000_s16 = smov %s995_s25 }
  0xe1   :  { %385 = vsyncpa [#allocation4], 1 }
  0xe2   :  { %387 = vsyncpa [#allocation4 + $0x1], 1 }
  0xe3   :  { %388 = vsyncpa [#allocation7], 1 }
  0xe4   :  { %390 = vsyncpa [#allocation7 + $0x1], 1 }
  0xe5   :  { %391 = vsyncpa [#allocation5], 1 }
  0xe6   :  { %393 = vsyncpa [#allocation5 + $0x1], 1 }

</bundles_post_ra>
